<compile_context>
chip_gen: v6e
topology: v6e:2x2x1
jax: 0.10.0
libtpu: 0.0.40
codegen_flags: <defaults>
</compile_context>

<pallas_src>
import functools

import jax
import jax.numpy as jnp
from jax import lax
from jax.experimental import pallas as pl
from jax.experimental.pallas import tpu as pltpu

LANES = 128
BLOCK_M_MAX = 2048   # rows per block; 2048*128*4B = 1 MiB per input per buffer
NUM_CORES = 2        # "parallel" leading axis: 2 TCs on v7x, serial elsewhere


def _round_up(x, m):
    return (x + m - 1) // m * m


def _depth_loss_kernel(pred_ref, lab_ref, s1_ref, s2_ref, *,
                       block_m, steps_per_core, rows, ragged):
    c = pl.program_id(0)   # core-split axis ("parallel")
    j = pl.program_id(1)   # reduction axis ("arbitrary")

    @pl.when(j == 0)
    def _():
        s1_ref[...] = jnp.zeros_like(s1_ref)
        s2_ref[...] = jnp.zeros_like(s2_ref)

    # Hot path: in-register upcast + single fused log (one EUP op, not two).
    p = pred_ref[...].astype(jnp.float32)
    t = lab_ref[...].astype(jnp.float32)
    d = jnp.log(p / t)

    if ragged:
        # Mask rows past the true extent.  Covers both the partial last block
        # and fully-duplicated (clamped) trailing grid steps; masked lanes
        # contribute exactly 0 to both sums.
        row0 = (c * steps_per_core + j) * block_m
        gidx = row0 + lax.broadcasted_iota(jnp.int32, (block_m, LANES), 0)
        d = jnp.where(gidx < rows, d, 0.0)

    # Fold into a vreg-shaped (8,128) accumulator: pure VPU adds per step,
    # no per-step cross-lane reduction, better accumulation accuracy.
    df = d.reshape(block_m // 8, 8, LANES)
    s1_ref[0] += jnp.sum(df, axis=0)
    s2_ref[0] += jnp.sum(df * df, axis=0)


def depth_loss(pred, labels):
    """pred, labels: NCHW arrays of equal shape, strictly positive."""
    assert pred.shape == labels.shape, "Shapes are inconsistent with each other"
    N, C, H, W = pred.shape
    n = H * W
    total = N * C * H * W

    def to_rows(x):
        flat = x.reshape(-1)                 # native dtype, no cast
        if total % LANES != 0:
            # Rare ragged-lane fallback: pad with 1.0 (log(1/1) = 0) so the
            # flat array reshapes to (rows, 128).  Common NCHW shapes take the
            # zero-copy path above.
            pad = LANES - total % LANES
            flat = jnp.concatenate([flat, jnp.ones((pad,), flat.dtype)])
        return flat.reshape(-1, LANES)       # metadata-only in the common case

    pred2d = to_rows(pred)
    lab2d = to_rows(labels)
    rows = pred2d.shape[0]

    block_m = min(BLOCK_M_MAX, _round_up(rows, 8))
    nblocks = pl.cdiv(rows, block_m)
    steps_per_core = pl.cdiv(nblocks, NUM_CORES)
    ragged = (NUM_CORES * steps_per_core * block_m != rows)

    def in_map(c, j):
        # Clamp so duplicated / trailing grid steps never index past the array.
        return (jnp.minimum(c * steps_per_core + j, nblocks - 1), 0)

    def out_map(c, j):
        return (c, 0, 0)

    s1_parts, s2_parts = pl.pallas_call(
        functools.partial(
            _depth_loss_kernel,
            block_m=block_m,
            steps_per_core=steps_per_core,
            rows=rows,
            ragged=ragged,
        ),
        out_shape=(
            jax.ShapeDtypeStruct((NUM_CORES, 8, LANES), jnp.float32),
            jax.ShapeDtypeStruct((NUM_CORES, 8, LANES), jnp.float32),
        ),
        grid_spec=pltpu.PrefetchScalarGridSpec(
            num_scalar_prefetch=0,
            grid=(NUM_CORES, steps_per_core),
            in_specs=[
                pl.BlockSpec((block_m, LANES), in_map),
                pl.BlockSpec((block_m, LANES), in_map),
            ],
            out_specs=[
                pl.BlockSpec((1, 8, LANES), out_map),
                pl.BlockSpec((1, 8, LANES), out_map),
            ],
        ),
        compiler_params=pltpu.CompilerParams(
            dimension_semantics=("parallel", "arbitrary"),
        ),
    )(pred2d, lab2d)

    # Tiny epilogue on (2, 8, 128) partial sums: single cross-lane reduce +
    # final scalar math, done once outside the hot loop.
    s1 = jnp.sum(s1_parts)
    s2 = jnp.sum(s2_parts)
    inv_n = 1.0 / float(n)
    return (inv_n * s2 - (inv_n * inv_n) * (s1 * s1)) / float(N)


def depth_loss_ref(pred, labels):
    N, C, H, W = pred.shape
    n = H * W
    d = jnp.log(pred.astype(jnp.float32)) - jnp.log(labels.astype(jnp.float32))
    return (1.0 / n * jnp.sum(d ** 2) - 1.0 / n ** 2 * jnp.sum(d) ** 2) / N


if __name__ == "__main__":
    key = jax.random.PRNGKey(0)
    k1, k2 = jax.random.split(key)
    N, C, H, W = 2, 4, 16, 16
    # strictly positive inputs (depth-like), deterministic
    pred = jax.random.uniform(k1, (N, C, H, W), jnp.float32, 0.1, 2.0)
    labels = jax.random.uniform(k2, (N, C, H, W), jnp.float32, 0.1, 2.0)

    loss = depth_loss(pred, labels)
    jax.block_until_ready(loss)

    ref = depth_loss_ref(pred, labels)
    assert jnp.allclose(loss, ref, rtol=1e-4, atol=1e-6), (loss, ref)

    print("KERNEL_OK")
</pallas_src>

<mosaic_0001>
module attributes {stable_mosaic.version = 11 : i64} {
  func.func @_depth_loss_kernel(%arg0: i32, %arg1: i32, %arg2: memref<16x128xf32, #tpu.memory_space<vmem>>, %arg3: memref<16x128xf32, #tpu.memory_space<vmem>>, %arg4: memref<1x8x128xf32, #tpu.memory_space<vmem>>, %arg5: memref<1x8x128xf32, #tpu.memory_space<vmem>>) attributes {dimension_semantics = [#tpu.dimension_semantics<parallel>, #tpu.dimension_semantics<arbitrary>], iteration_bounds = array<i64: 2, 1>, scalar_prefetch = 0 : i64, scratch_operands = 0 : i64, tpu.core_type = #tpu.core_type<tc>, window_params = [{transform_indices = @transform_0, window_bounds = array<i64: 16, 128>}, {transform_indices = @transform_1, window_bounds = array<i64: 16, 128>}, {transform_indices = @transform_2, window_bounds = array<i64: 1, 8, 128>}, {transform_indices = @transform_3, window_bounds = array<i64: 1, 8, 128>}]} {
    %c0_i32 = arith.constant 0 : i32
    %0 = arith.cmpi eq, %arg1, %c0_i32 : i32
    %1 = arith.extui %0 : i1 to i32
    %c0_i32_0 = arith.constant 0 : i32
    %2 = arith.cmpi ne, %1, %c0_i32_0 : i32
    scf.if %2 {
      %cst_19 = arith.constant 0.000000e+00 : f32
      %33 = vector.broadcast %cst_19 : f32 to vector<1x8x128xf32>
      %c0_20 = arith.constant 0 : index
      %c0_21 = arith.constant 0 : index
      %c0_22 = arith.constant 0 : index
      %34 = vector.load %arg4[%c0_20, %c0_21, %c0_22] : memref<1x8x128xf32, #tpu.memory_space<vmem>>, vector<1x8x128xf32>
      tpu.vector_store %arg4[%c0_20, %c0_21, %c0_22], %33 {strides = array<i32>} : memref<1x8x128xf32, #tpu.memory_space<vmem>>, vector<1x8x128xf32>,
      %cst_23 = arith.constant 0.000000e+00 : f32
      %35 = vector.broadcast %cst_23 : f32 to vector<1x8x128xf32>
      %c0_24 = arith.constant 0 : index
      %c0_25 = arith.constant 0 : index
      %c0_26 = arith.constant 0 : index
      %36 = vector.load %arg5[%c0_24, %c0_25, %c0_26] : memref<1x8x128xf32, #tpu.memory_space<vmem>>, vector<1x8x128xf32>
      tpu.vector_store %arg5[%c0_24, %c0_25, %c0_26], %35 {strides = array<i32>} : memref<1x8x128xf32, #tpu.memory_space<vmem>>, vector<1x8x128xf32>,
    } else {
    }
    %c0 = arith.constant 0 : index
    %c0_1 = arith.constant 0 : index
    %3 = vector.load %arg2[%c0, %c0_1] : memref<16x128xf32, #tpu.memory_space<vmem>>, vector<16x128xf32>
    %c0_2 = arith.constant 0 : index
    %c0_3 = arith.constant 0 : index
    %4 = vector.load %arg3[%c0_2, %c0_3] : memref<16x128xf32, #tpu.memory_space<vmem>>, vector<16x128xf32>
    %5 = arith.divf %3, %4 : vector<16x128xf32>
    %6 = math.log %5 : vector<16x128xf32>
    %c1_i32 = arith.constant 1 : i32
    %7 = arith.muli %arg0, %c1_i32 : i32
    %8 = arith.addi %7, %arg1 : i32
    %c16_i32 = arith.constant 16 : i32
    %9 = arith.muli %8, %c16_i32 : i32
    %10 = tpu.iota {dimensions = array<i32: 0>} : vector<16x128xi32>
    %11 = vector.broadcast %9 : i32 to vector<16x128xi32>
    %12 = arith.addi %11, %10 : vector<16x128xi32>
    %c16_i32_4 = arith.constant 16 : i32
    %13 = vector.broadcast %c16_i32_4 : i32 to vector<16x128xi32>
    %14 = arith.cmpi slt, %12, %13 : vector<16x128xi32>
    %cst = arith.constant 0.000000e+00 : f32
    %15 = vector.broadcast %cst : f32 to vector<16x128xf32>
    %16 = arith.select %14, %6, %15 : vector<16x128xi1>, vector<16x128xf32>
    %17 = vector.shape_cast %16 : vector<16x128xf32> to vector<2x8x128xf32>
    %c0_5 = arith.constant 0 : index
    %c0_6 = arith.constant 0 : index
    %c0_7 = arith.constant 0 : index
    %18 = vector.load %arg4[%c0_5, %c0_6, %c0_7] : memref<1x8x128xf32, #tpu.memory_space<vmem>>, vector<1x8x128xf32>
    %19 = vector.shape_cast %18 : vector<1x8x128xf32> to vector<8x128xf32>
    %cst_8 = arith.constant dense<0.000000e+00> : vector<8x128xf32>
    %20 = vector.multi_reduction <add>, %17, %cst_8 [0] : vector<2x8x128xf32> to vector<8x128xf32>
    %21 = arith.addf %19, %20 : vector<8x128xf32>
    %c0_9 = arith.constant 0 : index
    %c0_10 = arith.constant 0 : index
    %c0_11 = arith.constant 0 : index
    %22 = vector.load %arg4[%c0_9, %c0_10, %c0_11] : memref<1x8x128xf32, #tpu.memory_space<vmem>>, vector<1x8x128xf32>
    %23 = vector.shape_cast %22 : vector<1x8x128xf32> to vector<8x128xf32>
    %24 = vector.shape_cast %21 : vector<8x128xf32> to vector<1x8x128xf32>
    tpu.vector_store %arg4[%c0_9, %c0_10, %c0_11], %24 {strides = array<i32>} : memref<1x8x128xf32, #tpu.memory_space<vmem>>, vector<1x8x128xf32>,
    %c0_12 = arith.constant 0 : index
    %c0_13 = arith.constant 0 : index
    %c0_14 = arith.constant 0 : index
    %25 = vector.load %arg5[%c0_12, %c0_13, %c0_14] : memref<1x8x128xf32, #tpu.memory_space<vmem>>, vector<1x8x128xf32>
    %26 = vector.shape_cast %25 : vector<1x8x128xf32> to vector<8x128xf32>
    %27 = arith.mulf %17, %17 : vector<2x8x128xf32>
    %cst_15 = arith.constant dense<0.000000e+00> : vector<8x128xf32>
    %28 = vector.multi_reduction <add>, %27, %cst_15 [0] : vector<2x8x128xf32> to vector<8x128xf32>
    %29 = arith.addf %26, %28 : vector<8x128xf32>
    %c0_16 = arith.constant 0 : index
    %c0_17 = arith.constant 0 : index
    %c0_18 = arith.constant 0 : index
    %30 = vector.load %arg5[%c0_16, %c0_17, %c0_18] : memref<1x8x128xf32, #tpu.memory_space<vmem>>, vector<1x8x128xf32>
    %31 = vector.shape_cast %30 : vector<1x8x128xf32> to vector<8x128xf32>
    %32 = vector.shape_cast %29 : vector<8x128xf32> to vector<1x8x128xf32>
    tpu.vector_store %arg5[%c0_16, %c0_17, %c0_18], %32 {strides = array<i32>} : memref<1x8x128xf32, #tpu.memory_space<vmem>>, vector<1x8x128xf32>,
    return
  }
  func.func @transform_0(%arg0: i32, %arg1: i32) -> (i32, i32) {
    %c1_i32 = arith.constant 1 : i32
    %0 = arith.muli %arg0, %c1_i32 : i32
    %1 = arith.addi %0, %arg1 : i32
    %c0_i32 = arith.constant 0 : i32
    %2 = arith.minsi %1, %c0_i32 : i32
    %c0_i32_0 = arith.constant 0 : i32
    %c0_i32_1 = arith.constant 0 : i32
    return %2, %c0_i32_0 : i32, i32
  }
  func.func @transform_1(%arg0: i32, %arg1: i32) -> (i32, i32) {
    %c1_i32 = arith.constant 1 : i32
    %0 = arith.muli %arg0, %c1_i32 : i32
    %1 = arith.addi %0, %arg1 : i32
    %c0_i32 = arith.constant 0 : i32
    %2 = arith.minsi %1, %c0_i32 : i32
    %c0_i32_0 = arith.constant 0 : i32
    %c0_i32_1 = arith.constant 0 : i32
    return %2, %c0_i32_0 : i32, i32
  }
  func.func @transform_2(%arg0: i32, %arg1: i32) -> (i32, i32, i32) {
    %c0_i32 = arith.constant 0 : i32
    %c0_i32_0 = arith.constant 0 : i32
    %c0_i32_1 = arith.constant 0 : i32
    return %arg0, %c0_i32, %c0_i32_0 : i32, i32, i32
  }
  func.func @transform_3(%arg0: i32, %arg1: i32) -> (i32, i32, i32) {
    %c0_i32 = arith.constant 0 : i32
    %c0_i32_0 = arith.constant 0 : i32
    %c0_i32_1 = arith.constant 0 : i32
    return %arg0, %c0_i32, %c0_i32_0 : i32, i32, i32
  }
}

</mosaic_0001>

<bundles_post_ra>
// kernel: tpu_custom_call.1
= control target key start
LH: loop header
LB: loop body
LE: loop exit
PB: predicated region body
PF: predicated region fallthrough
CT: control target
= control target key end

     0   :  { %9 = vsyncpa [#allocation3], 0  ;;  %s1060_s0 = inlined_call_operand.hbm [shape: f32[16,128], index: 0, kind: input, shape index: {}]   ;;  %s1061_s1 = inlined_call_operand.hbm [shape: f32[16,128], index: 1, kind: input, shape index: {}]   ;;  %s1062_s2 = inlined_call_operand.hbm [shape: f32[2,8,128], index: 2, kind: output, shape index: {0}]   ;;  %s1063_s3 = inlined_call_operand.hbm [shape: f32[2,8,128], index: 3, kind: output, shape index: {1}]  }
   0x1   :  { %11 = vsyncpa [#allocation3 + $0x1], 0 }
   0x2   :  { %12 = vsyncpa [#allocation6], 0 }
   0x3   :  { %14 = vsyncpa [#allocation6 + $0x1], 0 }
   0x4   :  { %15 = vsyncpa [#allocation4], 0 }
   0x5   :  { %17 = vsyncpa [#allocation4 + $0x1], 0 }
   0x6   :  { %18 = vsyncpa [#allocation9], 0 }
   0x7   :  { %20 = vsyncpa [#allocation9 + $0x1], 0  ;;  %s833_s12 = smov 0   ;;  %s835_s13 = smov 0  }
   0x8   :  { %s837_s14 = smov 0   ;;  %s839_s15 = smov 0  }
   0x9   :  { %s841_s16 = smov 0   ;;  %s843_s17 = smov 0  }
   0xa   :  { %s845_s18 = smov 0   ;;  %s847_s19 = smov 0  }
   0xb LB: > { %s483_s20 = sadd.s32 4294967295, %s805_s19   ;;  %s484_s21 = sadd.s32 4294967294, %s805_s19   ;;  %s805_s19 = sphi %s847_s19, %s26_s19   ;;  %s801_s18 = sphi %s845_s18, %s1082_s18   ;;  %s797_s17 = sphi %s843_s17, %s1081_s17   ;;  %s793_s16 = sphi %s841_s16, %s1050_s16   ;;  %s789_s15 = sphi %s839_s15, %s1080_s15   ;;  %s785_s14 = sphi %s837_s14, %s1079_s14   ;;  %s781_s13 = sphi %s835_s13, %s1078_s13   ;;  %s777_s12 = sphi %s833_s12, %s1077_s12  }
   0xc   : > { %s38_s22 = sadd.s32 1, %s801_s18  ;;  %p774_p1 = scmp.ne.s32.totalorder %s793_s16, 0 }
   0xd   : > { %p40_p0 = scmp.ge.s32.totalorder %s38_s22, 2  ;;  %p59_p2 = scmp.eq.s32.totalorder %s805_s19, 0 }
   0xe   : > { %p64_p3 = scmp.ne.s32.totalorder %s793_s16, %s789_s15  ;;  %p65_p5 = scmp.eq.s32.totalorder %s483_s20, 0 }
   0xf   : > { %s1084_s22 = smov (%p40_p0, %s38_s22), 0  ;;  %p879_p4 = por %p774_p1, %p59_p2 }
  0x10   : > { %p883_p6 = por %p65_p5, %p64_p3  ;;  %s106_s25 = ssub.s32 %s801_s18, %s1084_s22 }
  0x11   : > { %p107_p7 = scmp.eq.s32.totalorder %s106_s25, 0  ;;  %s109_s26 = sadd.s32 1, %s785_s14 }
  0x12   : > { %s1067_s24 = scalar_select %p883_p6, 1, 0 }
  0x13   : > { %s891_s27 = scalar_select %p107_p7, %s785_s14, %s109_s26  }
  0x14   : > { %p119_p8 = scmp.ne.s32.totalorder %s785_s14, %s781_s13  ;;  %p120_p9 = scmp.eq.s32.totalorder %s483_s20, 1 }
  0x15   : > { %p125_p10 = scmp.ne.s32.totalorder %s781_s13, %s777_s12  ;;  %p126_p11 = scmp.eq.s32.totalorder %s484_s21, 1 }
  0x16   : > { %p897_p12 = por %p120_p9, %p119_p8  ;;  %p529_p1 = scmp.lt.s32.totalorder %s805_s19, 2 }
  0x17   : > { %p902_p0 = por %p126_p11, %p125_p10  ;;  %s807_s30 = smov [#allocation2]  }
  0x18   : > { %s1068_s28 = scalar_select %p897_p12, 1, 0 }
  0x19   : > { %s1069_s29 = scalar_select %p902_p0, 1, 0 }
  0x1a   : > { %s186_s4 = sshll.u32 %s807_s30, 4  ;;  %p909_p2 = pnand %p529_p1, %p879_p4  ;;  %s187_s4 = int_to_ptr.vmem [resolvable:$true] %s186_s4 }
  0x1b   : > { %s614_s8 = scalar_lea.hbm %s1060_s0, 256 }
  0x1c   : > { %p615_p3 = scmp.ne.s32.totalorder %s1060_s0, %s614_s8  ;;  %p616_p5 = pneg %p909_p2 }
  0x1d   : > { %p621_p8 = scmp.lt.s32.totalorder %s614_s8, %s614_s8 }
  0x1e   : > { %p617_p7 = pnand %p616_p5, %p615_p3 }
  0x20   : > { %p618_p4 = pneg %p617_p7 }
  0x22   : > { %p623_p9 = pnand %p621_p8, %p618_p4 }
  0x24   : > { %626 = shalt.err (!%p623_p9)
}
  0x25   : > { %s627_s11 = scalar_lea.vmem %s187_s4, 256  ;;  %s634_s15 = scalar_lea.vmem %s187_s4, 512 }
  0x26   : > { %p628_p10 = scmp.ne.s32.totalorder %s187_s4, %s627_s11  ;;  %p635_p13 = scmp.lt.s32.totalorder %s187_s4, %s187_s4 }
  0x27   : > { %p636_p0 = scmp.lt.s32.totalorder %s634_s15, %s627_s11 }
  0x28   : > { %p630_p11 = pnand %p628_p10, %p616_p5 }
  0x29   : > { %p637_p12 = por %p636_p0, %p635_p13 }
  0x2a   : > { %p631_p1 = pneg %p630_p11 }
  0x2c   : > { %p638_p6 = pnand %p637_p12, %p631_p1 }
  0x2e   : > { %641 = shalt.err (!%p638_p6)
}
  0x2f   : > { %s808_s20 = smov 128   ;;  %s809_s21 = smov 8  }
  0x30   : > { %518 = dma.hbm_to_vmem [thread:$0]  (!%p909_p2), %s1060_s0, 256, %s187_s4, [#allocation3], %s808_s20, %s808_s20, %s809_s21  }
  0x31   : > { %p493_p3 = scmp.ge.s32.totalorder %s805_s19, 1  ;;  %p218_p7 = scmp.lt.s32.totalorder %s805_s19, 3 }
  0x32   : > { %s810_s30 = smov [#allocation5]   ;;  %s642_s9 = scalar_lea.hbm %s1061_s1, 256 }
  0x33   : > { %p934_p4 = pnand %p493_p3, %p218_p7  ;;  %s210_s6 = sshll.u32 %s810_s30, 4  ;;  %s211_s6 = int_to_ptr.vmem [resolvable:$true] %s210_s6 }
  0x34   : > { %p643_p6 = scmp.ne.s32.totalorder %s1061_s1, %s642_s9  ;;  %p649_p0 = scmp.lt.s32.totalorder %s642_s9, %s642_s9 }
  0x35   : > { %s1071_s26 = scalar_select %p934_p4, 1, 0 }
  0x36   : > { %p645_p12 = pnand %p643_p6, %p616_p5 }
  0x38   : > { %p646_p13 = pneg %p645_p12 }
  0x3a   : > { %p651_p8 = pnand %p649_p0, %p646_p13 }
  0x3c   : > { %654 = shalt.err (!%p651_p8)
}
  0x3d   : > { %s655_s4 = scalar_lea.vmem %s211_s6, 256  ;;  %s662_s15 = scalar_lea.vmem %s211_s6, 512 }
  0x3e   : > { %p656_p9 = scmp.ne.s32.totalorder %s211_s6, %s655_s4  ;;  %p663_p1 = scmp.lt.s32.totalorder %s211_s6, %s211_s6 }
  0x3f   : > { %p664_p3 = scmp.lt.s32.totalorder %s662_s15, %s655_s4 }
  0x40   : > { %p658_p10 = pnand %p656_p9, %p616_p5 }
  0x41   : > { %p665_p7 = por %p664_p3, %p663_p1 }
  0x42   : > { %p659_p11 = pneg %p658_p10 }
  0x44   : > { %p666_p4 = pnand %p665_p7, %p659_p11 }
  0x46   : > { %669 = shalt.err (!%p666_p4)
}
  0x47   : > { %521 = dma.hbm_to_vmem [thread:$0]  (!%p909_p2), %s1061_s1, 256, %s211_s6, [#allocation6], %s808_s20, %s808_s20, %s809_s21  }
  0x48   : > { %p1072_p6 = scmp.ne.s32.totalorder %s1071_s26, 0 }
  0x49   : > { %s224_s30 = sand.u32 (!%p1072_p6), 1, %s793_s16   ;;  %p1073_p5 = scmp.ne.s32.totalorder (!%p1072_p6), %s1067_s24, 0 }
  0x4a   : > { %222 = sbr.rel (%p1072_p6) target bundleno = 154 (0x9a), region = 28  ;;  %s494_s7 = sshll.u32 (!%p1072_p6), %s224_s30, 4 }
  0x4b   : > { %s225_s8 = scalar_lea.sflag (!%p1072_p6), [#allocation3], %s224_s30  ;;  %s228_s9 = scalar_lea.vmem (!%p1072_p6), [#allocation2], %s494_s7 }
  0x4f   : > { %759 = dma.done.wait (%p1073_p5), %s225_s8, 256  }
  0x50   : > { %761 = vsyncadd (%p1073_p5), %s225_s8, 4294967040  ;;  %s234_s5 = scalar_lea.sflag [#allocation6], %s224_s30  ;;  %s237_s10 = scalar_lea.vmem [#allocation5], %s494_s7 }
  0x51   : > { %763 = dma.done.wait (%p1073_p5), %s234_s5, 256  }
  0x52   : > { %765 = vsyncadd (%p1073_p5), %s234_s5, 4294967040  ;;  %v286_v0 = vld [vmem:[%s237_s10] sm:$0xff]  ;;  %v287_v1 = vld [vmem:[%s237_s10 + $0x8] sm:$0xff]  ;;  %v298_v7 = vlaneseq  ;;  %s498_s20 = sshll.u32 %s797_s17, 4  ;;  %s968_s24 = sand.u32 1, %s781_s13  }
  0x53   : > { %606 = vrcp.f32 %v286_v0  ;;  %v284_v2 = vld [vmem:[%s228_s9] sm:$0xff]  ;;  %v285_v3 = vld [vmem:[%s228_s9 + $0x8] sm:$0xff]  ;;  %v301_v11 = vstv %s498_s20  ;;  %s496_s21 = sshll.u32 %s968_s24, 3  ;;  %s501_s26 = sshll.u32 %s797_s17, 7 }
  0x54   : > { %608 = vrcp.f32 %v287_v1  ;;  %v299_v9 = vshrl.u32 %v298_v7, 7  ;;  %s262_s6 = scalar_lea.vmem [#allocation7], %s496_s21  ;;  %s972_s4 = scalar_lea.vmem [#allocation8], %s496_s21 }
  0x55   : > { %s337_s11 = sshll.u32 %s262_s6, 4  ;;  %s350_s15 = sshll.u32 %s972_s4, 4  ;;  %s980_s11 = int_to_ptr.vmem [resolvable:$true] %s337_s11  ;;  %s987_s15 = int_to_ptr.vmem [resolvable:$true] %s350_s15 }
  0x56   : > { %v300_v10 = vadd.s32 8, %v299_v9  ;;  %v302_v12 = vadd.s32 %v301_v11, %v299_v9  ;;  %s978_s30 = scalar_lea.hbm %s1062_s2, %s501_s26  ;;  %s985_s8 = scalar_lea.hbm %s1063_s3, %s501_s26 }
  0x57   : > { %s319_s9 = scalar_lea.sflag [#allocation4], %s968_s24  ;;  %s670_s5 = scalar_lea.vmem %s980_s11, 128 }
  0x58   : > { %v303_v13 = vadd.s32 %v301_v11, %v300_v10  ;;  %vm304_vm0 = vcmp.lt.s32.totalorder %v302_v12, 16  ;;  %p671_p2 = scmp.ne.s32.totalorder %s980_s11, %s670_s5  ;;  %p1074_p4 = scmp.ne.s32.totalorder %s1068_s28, 0 }
  0x59   : > { %s811_s10 = smov [#allocation7]  }
  0x5a   : > { %vm305_vm1 = vcmp.lt.s32.totalorder %v303_v13, 16  ;;  %p672_p12 = pnand %p671_p2, %p1074_p4  ;;  %s674_s20 = sshll.u32 %s811_s10, 4  ;;  %s675_s20 = int_to_ptr.vmem [resolvable:$false] %s674_s20 }
  0x5b   : > { %s676_s21 = scalar_lea.vmem %s675_s20, 256  ;;  %p677_p0 = scmp.lt.s32.totalorder %s980_s11, %s675_s20 }
  0x5c   : > { %p673_p13 = pneg %p672_p12  ;;  %p678_p8 = scmp.lt.s32.totalorder %s676_s21, %s670_s5 }
  0x5e   : > { %p679_p9 = por %p678_p8, %p677_p0 }
  0x60   : > { %v607_v4 = vpop.eup %606  ;;  %p680_p10 = pnand %p679_p9, %p673_p13 }
  0x61   : > { %v609_v5 = vpop.eup %608  ;;  %v289_v6 = vmul.f32 %v607_v4, %v284_v2 }
  0x62   : > { %v291_v8 = vmul.f32 %v609_v5, %v285_v3 }
  0x63   : > { %610 = vlog2.f32 %v289_v6 }
  0x64   : > { %612 = vlog2.f32 %v291_v8 }
  0x70   : > { %v611_v14 = vpop.eup %610 }
  0x71   : > { %v613_v15 = vpop.eup %612  ;;  %v293_v16 = vmul.f32 0.6931472, %v611_v14 }
  0x72   : > { %v295_v17 = vmul.f32 0.6931472, %v613_v15 }
  0x73   : > { %v306_v18 = vsel %vm304_vm0, %v293_v16, 0.0 }
  0x74   : > { %v307_v19 = vsel %vm305_vm1, %v295_v17, 0.0  ;;  %v313_v20 = vmul.f32 %v306_v18, %v306_v18 }
  0x75   : > { %v309_v21 = vadd.f32 %v307_v19, %v306_v18  ;;  %v314_v22 = vmul.f32 %v307_v19, %v307_v19 }
  0x77   : > { %v315_v23 = vadd.f32 %v314_v22, %v313_v20  ;;  %311 = vst [vmem:[%s262_s6] sm:$0xff] %v309_v21 }
  0x78   : > { %683 = shalt.err (!%p680_p10)
}
  0x79   : > { %s684_s26 = scalar_lea.hbm %s978_s30, 128  ;;  %s688_s25 = scalar_lea.hbm %s1062_s2, 256 }
  0x7a   : > { %p685_p11 = scmp.ne.s32.totalorder %s978_s30, %s684_s26  ;;  %p689_p7 = scmp.lt.s32.totalorder %s978_s30, %s1062_s2 }
  0x7b   : > { %p690_p6 = scmp.lt.s32.totalorder %s688_s25, %s684_s26 }
  0x7c   : > { %p686_p1 = pnand %p685_p11, %p1074_p4 }
  0x7d   : > { %p691_p5 = por %p690_p6, %p689_p7 }
  0x7e   : > { %p687_p3 = pneg %p686_p1 }
  0x80   : > { %p692_p2 = pnand %p691_p5, %p687_p3 }
  0x82   : > { %695 = shalt.err (!%p692_p2)
}
  0x83   : > { %511 = dma.vmem_to_hbm [thread:$0]  (%p1074_p4), %s980_s11, 128, %s978_s30, %s319_s9   ;;  %317 = vst [vmem:[%s972_s4] sm:$0xff] %v315_v23 }
  0x84   : > { %s324_s5 = scalar_lea.sflag [#allocation9], %s968_s24  ;;  %s696_s10 = scalar_lea.vmem %s987_s15, 128 }
  0x85   : > { %p697_p12 = scmp.ne.s32.totalorder %s987_s15, %s696_s10  ;;  %s812_s20 = smov [#allocation8]  }
  0x86   : > { %s700_s21 = sshll.u32 %s812_s20, 4  ;;  %s701_s21 = int_to_ptr.vmem [resolvable:$false] %s700_s21 }
  0x87   : > { %p698_p13 = pnand %p697_p12, %p1074_p4  ;;  %s702_s26 = scalar_lea.vmem %s701_s21, 256 }
  0x88   : > { %p703_p8 = scmp.lt.s32.totalorder %s987_s15, %s701_s21  ;;  %p704_p9 = scmp.lt.s32.totalorder %s702_s26, %s696_s10 }
  0x89   : > { %p699_p0 = pneg %p698_p13 }
  0x8a   : > { %p705_p10 = por %p704_p9, %p703_p8 }
  0x8c   : > { %p706_p11 = pnand %p705_p10, %p699_p0 }
  0x8e   : > { %709 = shalt.err (!%p706_p11)
}
  0x8f   : > { %s710_s11 = scalar_lea.hbm %s985_s8, 128  ;;  %s714_s30 = scalar_lea.hbm %s1063_s3, 256 }
  0x90   : > { %p711_p1 = scmp.ne.s32.totalorder %s985_s8, %s710_s11  ;;  %p715_p6 = scmp.lt.s32.totalorder %s985_s8, %s1063_s3 }
  0x91   : > { %p716_p5 = scmp.lt.s32.totalorder %s714_s30, %s710_s11 }
  0x92   : > { %p712_p3 = pnand %p711_p1, %p1074_p4 }
  0x93   : > { %p717_p2 = por %p716_p5, %p715_p6 }
  0x94   : > { %p713_p7 = pneg %p712_p3 }
  0x96   : > { %p718_p12 = pnand %p717_p2, %p713_p7 }
  0x98   : > { %721 = shalt.err (!%p718_p12)
}
  0x99   : > { %512 = dma.vmem_to_hbm [thread:$0]  (%p1074_p4), %s987_s15, 128, %s985_s8, %s324_s5  }
  0x9a PF: > { %s362_s23 = sand.u32 1, %s777_s12   ;;  %p1075_p13 = scmp.ne.s32.totalorder %s1069_s29, 0 }
  0x9b   : > { %p1076_p0 = scmp.ge.s32.totalorder %s805_s19, 2  ;;  %s363_s25 = scalar_lea.sflag [#allocation4], %s362_s23 }
  0x9d   : > { %p523_p8 = pnand %p1076_p0, %p1075_p13 }
  0x9f   : > { %p524_p9 = pneg %p523_p8 }
  0xa1   : > { %767 = dma.done.wait (%p524_p9), %s363_s25, 128  }
  0xa2   : > { %769 = vsyncadd (%p524_p9), %s363_s25, 4294967168  ;;  %s372_s17 = scalar_lea.sflag [#allocation9], %s362_s23 }
  0xa3   : > { %771 = dma.done.wait (%p524_p9), %s372_s17, 128  }
  0xa4   : > { %773 = vsyncadd (%p524_p9), %s372_s17, 4294967168  ;;  %s26_s19 = sadd.s32 1, %s805_s19   ;;  %s1077_s12 = smov %s781_s13 }
  0xa5   : > { %p23_p10 = scmp.ge.s32.totalorder %s26_s19, 4   ;;  %s1078_s13 = smov %s785_s14 }
  0xa6   : > { %s1079_s14 = smov %s891_s27  ;;  %s1080_s15 = smov %s793_s16 }
  0xa7   : > { %s1050_s16 = smov 0   ;;  %s1081_s17 = smov %s801_s18 }
  0xa8   : > { %s1082_s18 = smov %s1084_s22  ;;  %25 = sbr.rel (!%p23_p10) target bundleno = 11 (0xb), region = 107 }
  0xad   :  { %377 = vsyncpa [#allocation3], 1 }
  0xae   :  { %379 = vsyncpa [#allocation3 + $0x1], 1 }
  0xaf   :  { %380 = vsyncpa [#allocation6], 1 }
  0xb0   :  { %382 = vsyncpa [#allocation6 + $0x1], 1 }
  0xb1   :  { %383 = vsyncpa [#allocation4], 1 }
  0xb2   :  { %385 = vsyncpa [#allocation4 + $0x1], 1 }
  0xb3   :  { %386 = vsyncpa [#allocation9], 1 }
  0xb4   :  { %388 = vsyncpa [#allocation9 + $0x1], 1 }

</bundles_post_ra>
